<compile_context>
chip_gen: v7x
topology: tpu7x:2x2x1
jax: 0.10.0
libtpu: 0.0.40
codegen_flags: <defaults>
</compile_context>

<pallas_src>
import functools

import jax
import jax.numpy as jnp
from jax import lax
from jax.experimental import pallas as pl
from jax.experimental.pallas import tpu as pltpu

ALPHA = 0.25   # unused in forward path (kept for parity with the module)
GAMMA = 2      # focal exponent
EPS = 1e-7     # unused in forward path


def focal_loss_kernel(logits_ref, tgt_ref, out_ref, *, n_true, tiles_per_core):
    """One grid step: accumulate this core's sum of per-row NLL into out_ref."""
    core = pl.program_id(0)     # "parallel" row-split (v7x: one per TensorCore)
    step = pl.program_id(1)     # "arbitrary" streaming axis

    @pl.when(step == 0)
    def _init():
        out_ref[...] = jnp.zeros_like(out_ref)

    # Cast in VMEM (no wrapper upcast): bf16 inputs are DMA'd at half the bytes.
    logits = logits_ref[...].astype(jnp.float32)            # (tile_n, C)
    tgt = tgt_ref[...]                                       # (tile_n, 1) int32
    tn, c = logits.shape

    # one-hot pick of the target logit; (1, C) iota broadcasts against (tile_n, 1)
    col = lax.broadcasted_iota(jnp.int32, (1, c), 1)
    onehot = col == tgt                                      # (tile_n, C)

    # numerically stable per-row NLL, reusing the max-shifted tile for the pick
    m = jnp.max(logits, axis=-1, keepdims=True)              # (tile_n, 1)
    shifted = logits - m
    lse = jnp.log(jnp.sum(jnp.exp(shifted), axis=-1, keepdims=True))
    picked = jnp.sum(jnp.where(onehot, shifted, 0.0), axis=-1, keepdims=True)
    nll = lse - picked                                       # (tile_n, 1)

    # Mask rows past the true N: covers the partial last block (no wrapper pad)
    # and the (at most one) clamped duplicate step. Uses the UNclamped index.
    row = lax.broadcasted_iota(jnp.int32, (tn, 1), 0)
    block_idx = core * tiles_per_core + step
    valid = block_idx * tn + row < n_true
    partial = jnp.sum(jnp.where(valid, nll, 0.0), axis=(0, 1), keepdims=True)
    out_ref[...] += partial.reshape(1, 1, 1)


def focal_loss(logits, targets, *, tile_n=None, vmem_limit_bytes=32 * 1024 * 1024):
    """logits: (N, C) f32/bf16, targets: (N,) int class indices -> f32 scalar."""
    n, c = logits.shape
    itemsize = jnp.dtype(logits.dtype).itemsize
    row_mult = 16 if itemsize == 2 else 8

    def _round_up(x, m):
        return ((x + m - 1) // m) * m

    if tile_n is None:
        # Per-row bytes resident in VMEM at once:
        #   2x double-buffered logits rows + 2x lane-padded (tile_n, 1) targets
        #   rows + ~3 full-tile f32 temporaries (shifted / exp / select).
        buf_bytes_per_row = 2 * (c * itemsize + 128 * 4)
        tmp_bytes_per_row = 3 * c * 4
        budget_bytes = 20 * 1024 * 1024        # headroom under the 32 MiB limit
        tile_n = budget_bytes // (buf_bytes_per_row + tmp_bytes_per_row)
    tile_n = min(int(tile_n), 8192, _round_up(n, row_mult))
    tile_n = max(row_mult, (tile_n // row_mult) * row_mult)

    num_tiles = pl.cdiv(n, tile_n)
    num_splits = min(2, num_tiles)             # v7x: one partial sum per TensorCore
    tiles_per_core = pl.cdiv(num_tiles, num_splits)
    last_block = num_tiles - 1

    tgt2d = targets.astype(jnp.int32).reshape(n, 1)

    def data_map(p, i):
        # Clamp so the (at most one) fully-out-of-range grid step re-reads the
        # last real block instead of indexing past the array; the in-kernel row
        # mask zeroes its contribution.
        return (jnp.minimum(p * tiles_per_core + i, last_block), 0)

    kernel = functools.partial(
        focal_loss_kernel, n_true=n, tiles_per_core=tiles_per_core)

    partials = pl.pallas_call(
        kernel,
        out_shape=jax.ShapeDtypeStruct((num_splits, 1, 1), jnp.float32),
        grid_spec=pltpu.PrefetchScalarGridSpec(
            num_scalar_prefetch=0,
            grid=(num_splits, tiles_per_core),
            in_specs=[
                pl.BlockSpec((tile_n, c), data_map),
                pl.BlockSpec((tile_n, 1), data_map),
            ],
            out_specs=pl.BlockSpec((1, 1, 1), lambda p, i: (p, 0, 0)),
        ),
        compiler_params=pltpu.CompilerParams(
            dimension_semantics=("parallel", "arbitrary"),
            vmem_limit_bytes=vmem_limit_bytes,
        ),
    )(logits, tgt2d)

    # Epilogue (4 scalar ops) in the wrapper, exactly the torch module:
    ce = jnp.sum(partials) / n                 # CrossEntropyLoss(reduction='mean')
    p = jnp.exp(-ce)
    return (1.0 - p) ** GAMMA * ce             # .mean() of a scalar is itself


def focal_loss_ref(logits, targets):
    """Pure-JAX reference mirroring the torch semantics (f32 math)."""
    logits = logits.astype(jnp.float32)
    logp_per = -jax.nn.log_softmax(logits, axis=-1)
    nll = jnp.take_along_axis(logp_per, targets[:, None], axis=-1)[:, 0]
    ce = jnp.mean(nll)
    p = jnp.exp(-ce)
    return (1.0 - p) ** GAMMA * ce


if __name__ == "__main__":
    key = jax.random.PRNGKey(0)
    k1, k2, k3, k4 = jax.random.split(key, 4)

    # --- small f32 case (single tile, single core-split) ---
    N, C = 8, 128
    logits = jax.random.normal(k1, (N, C), dtype=jnp.float32)
    targets = jax.random.randint(k2, (N,), 0, C, dtype=jnp.int32)
    out = jax.block_until_ready(focal_loss(logits, targets))
    ref = focal_loss_ref(logits, targets)
    assert jnp.allclose(out, ref, rtol=1e-5, atol=1e-6), (out, ref)

    # --- bf16 input path: DMA'd as bf16, upcast to f32 inside the kernel ---
    logits_bf16 = logits.astype(jnp.bfloat16)
    out_bf16 = jax.block_until_ready(focal_loss(logits_bf16, targets))
    ref_bf16 = focal_loss_ref(logits_bf16, targets)
    assert jnp.allclose(out_bf16, ref_bf16, rtol=1e-4, atol=1e-5), (out_bf16, ref_bf16)

    # --- ragged multi-tile path: exercises both core splits, the accumulator,
    #     the partial (unpadded) last block, and the clamped duplicate step ---
    N2, C2 = 300, 256
    logits2 = jax.random.normal(k3, (N2, C2), dtype=jnp.float32)
    targets2 = jax.random.randint(k4, (N2,), 0, C2, dtype=jnp.int32)
    out2 = jax.block_until_ready(focal_loss(logits2, targets2, tile_n=64))
    ref2 = focal_loss_ref(logits2, targets2)
    assert jnp.allclose(out2, ref2, rtol=1e-5, atol=1e-6), (out2, ref2)

    print("KERNEL_OK")
</pallas_src>

<mosaic_0001>
module attributes {stable_mosaic.version = 11 : i64} {
  func.func @focal_loss_kernel(%arg0: i32, %arg1: i32, %arg2: memref<8x128xf32, #tpu.memory_space<vmem>>, %arg3: memref<8x1xi32, #tpu.memory_space<vmem>>, %arg4: memref<1x1x1xf32, #tpu.memory_space<vmem>>) attributes {dimension_semantics = [#tpu.dimension_semantics<parallel>, #tpu.dimension_semantics<arbitrary>], iteration_bounds = array<i64: 1, 1>, scalar_prefetch = 0 : i64, scratch_operands = 0 : i64, tpu.core_type = #tpu.core_type<tc>, window_params = [{transform_indices = @transform_0, window_bounds = array<i64: 8, 128>}, {transform_indices = @transform_1, window_bounds = array<i64: 8, 1>}, {transform_indices = @transform_2, window_bounds = array<i64: 1, 1, 1>}]} {
    %c0_i32 = arith.constant 0 : i32
    %0 = arith.cmpi eq, %arg1, %c0_i32 : i32
    %1 = arith.extui %0 : i1 to i32
    %c0_i32_0 = arith.constant 0 : i32
    %2 = arith.cmpi ne, %1, %c0_i32_0 : i32
    scf.if %2 {
      %cst_16 = arith.constant 0.000000e+00 : f32
      %41 = vector.broadcast %cst_16 : f32 to vector<1x1x1xf32>
      %c0_17 = arith.constant 0 : index
      %c0_18 = arith.constant 0 : index
      %c0_19 = arith.constant 0 : index
      %42 = vector.load %arg4[%c0_17, %c0_18, %c0_19] : memref<1x1x1xf32, #tpu.memory_space<vmem>>, vector<1x1x1xf32>
      tpu.vector_store %arg4[%c0_17, %c0_18, %c0_19], %41 {strides = array<i32>} : memref<1x1x1xf32, #tpu.memory_space<vmem>>, vector<1x1x1xf32>,
    } else {
    }
    %c0 = arith.constant 0 : index
    %c0_1 = arith.constant 0 : index
    %3 = vector.load %arg2[%c0, %c0_1] : memref<8x128xf32, #tpu.memory_space<vmem>>, vector<8x128xf32>
    %c0_2 = arith.constant 0 : index
    %c0_3 = arith.constant 0 : index
    %4 = vector.load %arg3[%c0_2, %c0_3] : memref<8x1xi32, #tpu.memory_space<vmem>>, vector<8x1xi32>
    %5 = tpu.iota {dimensions = array<i32: 1>} : vector<1x128xi32>
    %6 = vector.broadcast %5 : vector<1x128xi32> to vector<8x128xi32>
    %7 = vector.broadcast %4 : vector<8x1xi32> to vector<8x128xi32>
    %8 = arith.cmpi eq, %6, %7 : vector<8x128xi32>
    %cst = arith.constant dense<0xFF800000> : vector<8xf32>
    %9 = vector.multi_reduction <maximumf>, %3, %cst [1] : vector<8x128xf32> to vector<8xf32>
    %10 = vector.shape_cast %9 : vector<8xf32> to vector<8x1xf32>
    %11 = vector.broadcast %10 : vector<8x1xf32> to vector<8x128xf32>
    %12 = arith.subf %3, %11 : vector<8x128xf32>
    %13 = math.exp %12 : vector<8x128xf32>
    %cst_4 = arith.constant dense<0.000000e+00> : vector<8xf32>
    %14 = vector.multi_reduction <add>, %13, %cst_4 [1] : vector<8x128xf32> to vector<8xf32>
    %15 = vector.shape_cast %14 : vector<8xf32> to vector<8x1xf32>
    %16 = math.log %15 : vector<8x1xf32>
    %cst_5 = arith.constant 0.000000e+00 : f32
    %17 = vector.broadcast %cst_5 : f32 to vector<8x128xf32>
    %18 = arith.select %8, %12, %17 : vector<8x128xi1>, vector<8x128xf32>
    %cst_6 = arith.constant dense<0.000000e+00> : vector<8xf32>
    %19 = vector.multi_reduction <add>, %18, %cst_6 [1] : vector<8x128xf32> to vector<8xf32>
    %20 = vector.shape_cast %19 : vector<8xf32> to vector<8x1xf32>
    %21 = arith.subf %16, %20 : vector<8x1xf32>
    %22 = tpu.iota {dimensions = array<i32: 0>} : vector<8x1xi32>
    %c1_i32 = arith.constant 1 : i32
    %23 = arith.muli %arg0, %c1_i32 : i32
    %24 = arith.addi %23, %arg1 : i32
    %c8_i32 = arith.constant 8 : i32
    %25 = arith.muli %24, %c8_i32 : i32
    %26 = vector.broadcast %25 : i32 to vector<8x1xi32>
    %27 = arith.addi %26, %22 : vector<8x1xi32>
    %c8_i32_7 = arith.constant 8 : i32
    %28 = vector.broadcast %c8_i32_7 : i32 to vector<8x1xi32>
    %29 = arith.cmpi slt, %27, %28 : vector<8x1xi32>
    %cst_8 = arith.constant 0.000000e+00 : f32
    %30 = vector.broadcast %cst_8 : f32 to vector<8x1xf32>
    %31 = arith.select %29, %21, %30 : vector<8x1xi1>, vector<8x1xf32>
    %32 = vector.shape_cast %31 : vector<8x1xf32> to vector<1x8x1xf32>
    %cst_9 = arith.constant dense<0.000000e+00> : vector<1xf32>
    %33 = vector.multi_reduction <add>, %32, %cst_9 [1, 2] : vector<1x8x1xf32> to vector<1xf32>
    %34 = vector.shape_cast %33 : vector<1xf32> to vector<1x1x1xf32>
    %35 = vector.extract %34[0, 0, 0] : f32 from vector<1x1x1xf32>
    %36 = vector.broadcast %35 : f32 to vector<1x1xf32>
    %c0_10 = arith.constant 0 : index
    %c0_11 = arith.constant 0 : index
    %c0_12 = arith.constant 0 : index
    %37 = vector.load %arg4[%c0_10, %c0_11, %c0_12] : memref<1x1x1xf32, #tpu.memory_space<vmem>>, vector<1x1x1xf32>
    %38 = vector.shape_cast %36 : vector<1x1xf32> to vector<1x1x1xf32>
    %39 = arith.addf %37, %38 : vector<1x1x1xf32>
    %c0_13 = arith.constant 0 : index
    %c0_14 = arith.constant 0 : index
    %c0_15 = arith.constant 0 : index
    %40 = vector.load %arg4[%c0_13, %c0_14, %c0_15] : memref<1x1x1xf32, #tpu.memory_space<vmem>>, vector<1x1x1xf32>
    tpu.vector_store %arg4[%c0_13, %c0_14, %c0_15], %39 {strides = array<i32>} : memref<1x1x1xf32, #tpu.memory_space<vmem>>, vector<1x1x1xf32>,
    return
  }
  func.func @transform_0(%arg0: i32, %arg1: i32) -> (i32, i32) {
    %c1_i32 = arith.constant 1 : i32
    %0 = arith.muli %arg0, %c1_i32 : i32
    %1 = arith.addi %0, %arg1 : i32
    %c0_i32 = arith.constant 0 : i32
    %2 = arith.minsi %1, %c0_i32 : i32
    %c0_i32_0 = arith.constant 0 : i32
    %c0_i32_1 = arith.constant 0 : i32
    return %2, %c0_i32_0 : i32, i32
  }
  func.func @transform_1(%arg0: i32, %arg1: i32) -> (i32, i32) {
    %c1_i32 = arith.constant 1 : i32
    %0 = arith.muli %arg0, %c1_i32 : i32
    %1 = arith.addi %0, %arg1 : i32
    %c0_i32 = arith.constant 0 : i32
    %2 = arith.minsi %1, %c0_i32 : i32
    %c0_i32_0 = arith.constant 0 : i32
    %c0_i32_1 = arith.constant 0 : i32
    return %2, %c0_i32_0 : i32, i32
  }
  func.func @transform_2(%arg0: i32, %arg1: i32) -> (i32, i32, i32) {
    %c0_i32 = arith.constant 0 : i32
    %c0_i32_0 = arith.constant 0 : i32
    %c0_i32_1 = arith.constant 0 : i32
    return %arg0, %c0_i32, %c0_i32_0 : i32, i32, i32
  }
}

</mosaic_0001>

<bundles_post_ra>
// kernel: tpu_custom_call.1
= control target key start
LH: loop header
LB: loop body
LE: loop exit
PB: predicated region body
PF: predicated region fallthrough
CT: control target
= control target key end

     0   :  { %s215_s0 = inlined_call_operand.vmem [shape: f32[8,128], index: 0, kind: input, shape index: {}]   ;;  %s216_s1 = inlined_call_operand.vmem [shape: s32[8,1], index: 1, kind: input, shape index: {}]   ;;  %s217_s2 = inlined_call_operand.hbm [shape: f32[1,1,1], index: 2, kind: output, shape index: {}]  }
   0x1   :  { %v72_v0 = vld [vmem:[%s215_s0] sm:$0xff] }
   0x2   :  { %7 = vsyncpa [#allocation3], 0  ;;  %80 = vmax.xlane.f32.xlu0 %v72_v0  ;;  %v177_v1 = vmov 0   ;;  %v73_v2 = vld [vmem:[%s216_s1] sm:$0xff]  ;;  %v74_v6 = vlaneseq  ;;  %vm101_vm1 = vcmask 7168   ;;  %vm70_vm2 = vcmask 0  }
   0x3   :  { %148 = vset.pattern.permute.xlu0 %v177_v1  ;;  %v178_v17 = vmov 0.0   ;;  %s179_s0 = smov [#allocation2]  }
   0x4   :  { %v75_v7 = vand.u32 127, %v74_v6  ;;  %71 = vst.msk [vmem:[#allocation2] sm:$0x1] %vm70_vm2, %v178_v17  ;;  %s123_s1 = sshll.u32 %s179_s0, 4  ;;  %s124_s1 = int_to_ptr.vmem [resolvable:$true] %s123_s1 }
   0x5   :  { %s153_s14 = scalar_lea.vmem %s124_s1, 16  ;;  %s157_s15 = scalar_lea.vmem %s124_s1, 32 }
   0x6   :  { %p154_p0 = scmp.ne.s32.totalorder %s124_s1, %s153_s14  ;;  %p158_p1 = scmp.lt.s32.totalorder %s124_s1, %s124_s1 }
   0x7   :  { %p159_p2 = scmp.lt.s32.totalorder %s157_s15, %s153_s14 }
   0x9   :  { %p160_p3 = por %p159_p2, %p158_p1 }
   0xb   :  { %v112_v25 = vld [vmem:[#allocation2] sm:$0x1]  ;;  %p161_p4 = pnand %p160_p3, %p154_p0 }
  0x18   :  { %77 = vperm.xlu0 %148, %v73_v2  }
  0x8f   :  { %v81_v3 = vpop.xlane.xlu0 %80 }
  0x90   :  { %v82_v4 = vsub.f32 %v72_v0, %v81_v3 }
  0x92   :  { %v83_v5 = vmul.f32 1.442695, %v82_v4 }
  0x94   :  { %149 = vpow2.f32 %v83_v5 }
  0x97   :  { %v78_v8 = vpop.permute.xlu0 %77 }
  0x98   :  { %vm79_vm0 = vcmp.eq.s32.totalorder %v75_v7, %v78_v8 }
  0x99   :  { %v89_v10 = vsel %vm79_vm0, %v82_v4, 0.0 }
  0x9e   :  { %v150_v9 = vpop.eup %149 }
  0x9f   :  { %85 = vadd.xlane.f32.xlu1 %v150_v9 }
  0xa3   :  { %90 = vadd.xlane.f32.xlu1 %v89_v10 }
 0x12c   :  { %v86_v11 = vpop.xlane.xlu1 %85 }
 0x12d   :  { %151 = vlog2.f32 %v86_v11 }
 0x130   :  { %v91_v14 = vpop.xlane.xlu1 %90 }
 0x137   :  { %v152_v12 = vpop.eup %151 }
 0x138   :  { %v88_v13 = vmul.f32 0.6931472, %v152_v12 }
 0x13a   :  { %v92_v15 = vsub.f32 %v88_v13, %v91_v14 }
 0x13c   :  { %v102_v16 = vsel %vm101_vm1, %v92_v15, 0.0 }
 0x13d   :  { %103 = vadd.xlane.f32.xlu1 %v102_v16 }
 0x1ca   :  { %v104_v18 = vpop.xlane.xlu1 %103 }
 0x1cb   :  { %v105_v19 = vrot.slane %v104_v18, 4 }
 0x1cd   :  { %v106_v20 = vadd.f32 %v105_v19, %v104_v18 }
 0x1cf   :  { %v107_v21 = vrot.slane %v106_v20, 2 }
 0x1d1   :  { %v108_v22 = vadd.f32 %v107_v21, %v106_v20 }
 0x1d3   :  { %v109_v23 = vrot.slane %v108_v22, 1 }
 0x1d5   :  { %v110_v24 = vadd.f32 %v109_v23, %v108_v22 }
 0x1d7   :  { %143 = vpush %v110_v24 }
 0x208   :  { %s144_s13 = spop %143 }
 0x209   :  { %v113_v26 = vstv %s144_s13 }
 0x20a   :  { %v114_v27 = vadd.f32 %v113_v26, %v112_v25 }
 0x20c   :  { %116 = vst.msk [vmem:[#allocation2] sm:$0x1] %vm70_vm2, %v114_v27 }
 0x20d   :  { %164 = shalt.err (!%p161_p4)
}
 0x20e   :  { %s165_s18 = scalar_lea.hbm %s217_s2, 16 }
 0x20f   :  { %p166_p5 = scmp.ne.s32.totalorder %s217_s2, %s165_s18  ;;  %p169_p6 = scmp.lt.u32.totalorder %s165_s18, %s217_s2 }
 0x211   :  { %p171_p7 = pnand %p169_p6, %p166_p5 }
 0x213   :  { %174 = shalt.err (!%p171_p7)
}
 0x214   :  { %126 = dma.vmem_to_hbm [thread:$0]  %s124_s1, 16, %s217_s2, [#allocation3]  }
 0x215   :  { %175 = dma.done.wait [#allocation3], 16  }
 0x216   :  { %176 = vsyncadd [#allocation3], 4294967280 }
 0x217   :  { %130 = vsyncpa [#allocation3], 1 }

</bundles_post_ra>
